<compile_context>
chip_gen: v6e
topology: v6e:2x2x1
jax: 0.10.0
libtpu: 0.0.40
codegen_flags: <defaults>
</compile_context>

<pallas_src>
import jax
import jax.numpy as jnp
from jax.experimental import pallas as pl
from jax.experimental.pallas import tpu as pltpu


def _round_up(x, m):
    return (x + m - 1) // m * m


def _vmem_capacity_bytes():
    """Per-generation VMEM capacity, with a conservative (v7x) fallback."""
    try:
        cap = getattr(pltpu.get_tpu_info(), "vmem_capacity_bytes", None)
        if cap:
            return int(cap)
    except Exception:
        pass
    return 64 * 1024 * 1024


def classifier_kernel(x_ref, w_ref, b_ref, o_ref):
    # ReLU on the VPU, then one MXU matmul contracting the embed axis.
    # Weight was pre-transposed to [E, C] at init, so this is a plain
    # (lhs dim 1 x rhs dim 0) contraction -- no per-tile XLU transpose.
    # TODO(synk): optionally cast act/weight to bf16 (keep f32 accumulation)
    # for ~2-4x MXU throughput if the head tolerates it.
    act = jnp.maximum(x_ref[...], 0.0)
    y = jnp.dot(act, w_ref[...], preferred_element_type=jnp.float32)
    o_ref[...] = (y + b_ref[...]).astype(o_ref.dtype)


def prepare_classifier_params(weight, bias):
    """One-time (init-time) layout prep: transpose to [E, C], pad C to 128."""
    C, E = weight.shape
    C_pad = _round_up(max(C, 1), 128)
    w_t = jnp.transpose(weight)                      # [E, C]
    if C_pad != C:
        w_t = jnp.pad(w_t, ((0, 0), (0, C_pad - C)))
        bias = jnp.pad(bias, (0, C_pad - C))
    return w_t, bias.reshape(1, C_pad), C


def _pick_tm(B, fits):
    """Largest batch tile (multiple of 8, or B itself when B < 8) passing
    `fits`, clamped so the grid keeps >= 2 row tiles when the batch allows
    it (keeps both v7x TensorCores busy)."""
    if B < 8:
        return B if fits(B) else None
    upper = min(2048, _round_up(B, 8))
    if B >= 16:
        upper = min(upper, _round_up((B + 1) // 2, 8))
    tm = (upper // 8) * 8
    while tm >= 8:
        if fits(tm):
            return tm
        tm -= 8
    return None


def _make_plan(B, E, C_pad, vmem_cap):
    """Decide between a VMEM-resident weight (preferred) and class-tiled
    streaming, under a per-generation double-buffered VMEM budget."""
    budget = int(vmem_cap * 0.6)
    f32 = 4

    # --- Path A: full weight resident in VMEM, class axis untiled ---------
    # (weight/bias conservatively double-counted even though their block
    #  index is constant)
    def fits_resident(tm):
        return 2 * f32 * (tm * E + tm * C_pad + C_pad * E + C_pad) <= budget

    tm = _pick_tm(B, fits_resident)
    if tm is not None:
        return {"kind": "resident", "TM": tm}

    # --- Path B: class-tiled; re-stream whichever operand is cheaper ------
    for tn in (512, 256, 128):
        if C_pad % tn:
            continue
        tm = _pick_tm(
            B, lambda t, tn=tn: 2 * f32 * (t * E + t * tn + tn * E + tn) <= budget
        )
        if tm is not None:
            n_b = -(-B // tm)
            n_c = C_pad // tn
            weight_restream = n_b * C_pad * E   # batch-outer grid order
            x_restream = n_c * B * E            # class-outer grid order
            order = "batch_outer" if weight_restream <= x_restream else "class_outer"
            return {"kind": "streamed", "TM": tm, "TN": tn, "order": order}

    # TODO(synk): add an embed-dim (K) grid axis with an fp32 accumulator
    # scratch (init/finalize via pl.when) for very large embed dims.
    raise NotImplementedError(
        f"embed_dim={E} too large for single-pass tiling within "
        f"{budget} bytes of VMEM; K-tiling not implemented"
    )


def classifier_forward(x, w_t, b2d, num_class):
    """x: [B, E] f32. w_t: [E, C_pad] (pre-transposed/padded), b2d: [1, C_pad]."""
    B, E = x.shape
    E_w, C_pad = w_t.shape
    assert E == E_w and b2d.shape == (1, C_pad)

    vmem_cap = _vmem_capacity_bytes()
    plan = _make_plan(B, E, C_pad, vmem_cap)
    vmem_limit = max(32 * 1024 * 1024, int(vmem_cap * 0.75))
    TM = plan["TM"]

    if plan["kind"] == "resident":
        # Weight + bias have a constant block index => DMA'd to VMEM once and
        # kept resident across every batch tile; only x/out stream from HBM.
        grid = (pl.cdiv(B, TM),)
        in_specs = [
            pl.BlockSpec((TM, E), lambda i: (i, 0)),
            pl.BlockSpec((E, C_pad), lambda i: (0, 0)),
            pl.BlockSpec((1, C_pad), lambda i: (0, 0)),
        ]
        out_specs = pl.BlockSpec((TM, C_pad), lambda i: (i, 0))
        dim_sem = ("parallel",)
        bytes_accessed = 4 * (B * E + C_pad * E + B * C_pad + C_pad)
    else:
        TN = plan["TN"]
        n_b = pl.cdiv(B, TM)
        n_c = C_pad // TN
        if plan["order"] == "batch_outer":
            # x fetched once per row tile; weight re-streamed n_b times.
            grid = (n_b, n_c)
            in_specs = [
                pl.BlockSpec((TM, E), lambda i, j: (i, 0)),
                pl.BlockSpec((E, TN), lambda i, j: (0, j)),
                pl.BlockSpec((1, TN), lambda i, j: (0, j)),
            ]
            out_specs = pl.BlockSpec((TM, TN), lambda i, j: (i, j))
            bytes_accessed = 4 * (B * E + n_b * C_pad * E + B * C_pad + C_pad)
        else:
            # weight fetched once per class tile; x re-streamed n_c times.
            grid = (n_c, n_b)
            in_specs = [
                pl.BlockSpec((TM, E), lambda j, i: (i, 0)),
                pl.BlockSpec((E, TN), lambda j, i: (0, j)),
                pl.BlockSpec((1, TN), lambda j, i: (0, j)),
            ]
            out_specs = pl.BlockSpec((TM, TN), lambda j, i: (i, j))
            bytes_accessed = 4 * (n_c * B * E + C_pad * E + B * C_pad + C_pad)
        dim_sem = ("parallel", "parallel")

    out = pl.pallas_call(
        classifier_kernel,
        out_shape=jax.ShapeDtypeStruct((B, C_pad), x.dtype),
        grid_spec=pltpu.PrefetchScalarGridSpec(
            num_scalar_prefetch=0,
            grid=grid,
            in_specs=in_specs,
            out_specs=out_specs,
        ),
        compiler_params=pltpu.CompilerParams(
            # No reduction grid axis (E is contracted whole inside the body):
            # every axis is independent -> parallel (megacore-shardable).
            dimension_semantics=dim_sem,
            vmem_limit_bytes=vmem_limit,
        ),
        cost_estimate=pl.CostEstimate(
            flops=2 * B * E * C_pad,
            transcendentals=0,
            bytes_accessed=bytes_accessed,
        ),
    )(x, w_t, b2d)

    return out[:, :num_class]


if __name__ == "__main__":
    # Small shapes consistent with the module's forward: [batch, embed_dim]
    batch, embed_dim, num_class = 8, 32, 8
    initrange = 0.5

    key = jax.random.PRNGKey(0)
    k_x, k_w = jax.random.split(key)

    x = jax.random.normal(k_x, (batch, embed_dim), dtype=jnp.float32)

    # Deterministic init matching nn.Linear + init_weights:
    #   weight ~ U(-initrange, initrange), bias = 0
    weight = jax.random.uniform(
        k_w, (num_class, embed_dim), dtype=jnp.float32,
        minval=-initrange, maxval=initrange,
    )
    bias = jnp.zeros((num_class,), dtype=jnp.float32)

    # One-time (init-time) layout prep -- not repeated per forward call.
    w_t, b2d, n_class = prepare_classifier_params(weight, bias)

    out = classifier_forward(x, w_t, b2d, n_class)
    jax.block_until_ready(out)

    # Reference check in plain JAX (same semantics as the PyTorch module).
    ref = jnp.maximum(x, 0.0) @ weight.T + bias
    assert out.shape == (batch, num_class)
    assert jnp.allclose(out, ref, atol=1e-5, rtol=1e-5)

    print("KERNEL_OK")
</pallas_src>

<mosaic_0001>
module attributes {stable_mosaic.version = 11 : i64} {
  func.func @classifier_kernel(%arg0: i32, %arg1: memref<8x32xf32, #tpu.memory_space<vmem>>, %arg2: memref<32x128xf32, #tpu.memory_space<vmem>>, %arg3: memref<1x128xf32, #tpu.memory_space<vmem>>, %arg4: memref<8x128xf32, #tpu.memory_space<vmem>>) attributes {dimension_semantics = [#tpu.dimension_semantics<parallel>], iteration_bounds = array<i64: 1>, scalar_prefetch = 0 : i64, scratch_operands = 0 : i64, tpu.core_type = #tpu.core_type<tc>, window_params = [{transform_indices = @transform_0, window_bounds = array<i64: 8, 32>}, {pipeline_mode = #tpu.pipeline_mode<synchronous>, transform_indices = @transform_1, window_bounds = array<i64: 32, 128>}, {pipeline_mode = #tpu.pipeline_mode<synchronous>, transform_indices = @transform_2, window_bounds = array<i64: 1, 128>}, {transform_indices = @transform_3, window_bounds = array<i64: 8, 128>}]} {
    %c0 = arith.constant 0 : index
    %c0_0 = arith.constant 0 : index
    %0 = vector.load %arg1[%c0, %c0_0] : memref<8x32xf32, #tpu.memory_space<vmem>>, vector<8x32xf32>
    %cst = arith.constant 0.000000e+00 : f32
    %1 = vector.broadcast %cst : f32 to vector<8x32xf32>
    %2 = arith.maximumf %0, %1 : vector<8x32xf32>
    %c0_1 = arith.constant 0 : index
    %c0_2 = arith.constant 0 : index
    %3 = vector.load %arg2[%c0_1, %c0_2] : memref<32x128xf32, #tpu.memory_space<vmem>>, vector<32x128xf32>
    %cst_3 = arith.constant dense<0.000000e+00> : vector<8x128xf32>
    %4 = tpu.matmul %2, %3, %cst_3 {dimension_numbers = #tpu.dot_dimension_numbers<[1], [0], [0], [1], [0, 0, 1, 1], [], []>} : vector<8x32xf32>, vector<32x128xf32>, vector<8x128xf32> -> vector<8x128xf32>
    %c0_4 = arith.constant 0 : index
    %c0_5 = arith.constant 0 : index
    %5 = vector.load %arg3[%c0_4, %c0_5] : memref<1x128xf32, #tpu.memory_space<vmem>>, vector<1x128xf32>
    %6 = vector.broadcast %5 : vector<1x128xf32> to vector<8x128xf32>
    %7 = arith.addf %4, %6 : vector<8x128xf32>
    %c0_6 = arith.constant 0 : index
    %c0_7 = arith.constant 0 : index
    %8 = vector.load %arg4[%c0_6, %c0_7] : memref<8x128xf32, #tpu.memory_space<vmem>>, vector<8x128xf32>
    tpu.vector_store %arg4[%c0_6, %c0_7], %7 {strides = array<i32>} : memref<8x128xf32, #tpu.memory_space<vmem>>, vector<8x128xf32>,
    return
  }
  func.func @transform_0(%arg0: i32) -> (i32, i32) {
    %c0_i32 = arith.constant 0 : i32
    %c0_i32_0 = arith.constant 0 : i32
    return %arg0, %c0_i32 : i32, i32
  }
  func.func @transform_1(%arg0: i32) -> (i32, i32) {
    %c0_i32 = arith.constant 0 : i32
    %c0_i32_0 = arith.constant 0 : i32
    %c0_i32_1 = arith.constant 0 : i32
    return %c0_i32, %c0_i32_0 : i32, i32
  }
  func.func @transform_2(%arg0: i32) -> (i32, i32) {
    %c0_i32 = arith.constant 0 : i32
    %c0_i32_0 = arith.constant 0 : i32
    %c0_i32_1 = arith.constant 0 : i32
    return %c0_i32, %c0_i32_0 : i32, i32
  }
  func.func @transform_3(%arg0: i32) -> (i32, i32) {
    %c0_i32 = arith.constant 0 : i32
    %c0_i32_0 = arith.constant 0 : i32
    return %arg0, %c0_i32 : i32, i32
  }
}

</mosaic_0001>

<bundles_post_ra>
// kernel: tpu_custom_call.1
= control target key start
LH: loop header
LB: loop body
LE: loop exit
PB: predicated region body
PF: predicated region fallthrough
CT: control target
= control target key end

     0   :  { %8 = vsyncpa [#allocation3], 0  ;;  %s275_s0 = inlined_call_operand.hbm [shape: f32[8,32], index: 0, kind: input, shape index: {}]   ;;  %s276_s1 = inlined_call_operand.hbm [shape: f32[32,128], index: 1, kind: input, shape index: {}]   ;;  %s277_s2 = inlined_call_operand.vmem [shape: f32[1,128], index: 2, kind: input, shape index: {}]   ;;  %s278_s3 = inlined_call_operand.hbm [shape: f32[8,128], index: 3, kind: output, shape index: {}]  }
   0x1   :  { %9 = vsyncpa [#allocation6], 0 }
   0x2   :  { %10 = vsyncpa [#allocation4], 0  ;;  %s236_s12 = smov [#allocation2]   ;;  %s237_s14 = smov [#allocation5]  }
   0x3   :  { %s17_s13 = sshll.u32 %s236_s12, 4  ;;  %s26_s15 = sshll.u32 %s237_s14, 4  ;;  %s18_s13 = int_to_ptr.vmem [resolvable:$true] %s17_s13  ;;  %s27_s15 = int_to_ptr.vmem [resolvable:$true] %s26_s15 }
   0x4   :  { %s178_s16 = scalar_lea.vmem %s18_s13, 128  ;;  %p183_p1 = scmp.lt.s32.totalorder %s18_s13, %s18_s13 }
   0x5   :  { %p179_p0 = scmp.ne.s32.totalorder %s18_s13, %s178_s16  ;;  %p184_p2 = scmp.lt.s32.totalorder %s178_s16, %s178_s16 }
   0x7   :  { %p185_p3 = por %p184_p2, %p183_p1 }
   0x9   :  { %p186_p4 = pnand %p185_p3, %p179_p0 }
   0xb   :  { %189 = shalt.err (!%p186_p4)
}
   0xc   :  { %20 = dma.hbm_to_vmem [thread:$0]  %s275_s0, 128, %s18_s13, [#allocation3]  }
   0xd   :  { %s198_s19 = scalar_lea.vmem %s27_s15, 512  ;;  %p203_p6 = scmp.lt.s32.totalorder %s27_s15, %s27_s15 }
   0xe   :  { %p199_p5 = scmp.ne.s32.totalorder %s27_s15, %s198_s19  ;;  %p204_p7 = scmp.lt.s32.totalorder %s198_s19, %s198_s19 }
  0x10   :  { %p205_p8 = por %p204_p7, %p203_p6 }
  0x12   :  { %p206_p9 = pnand %p205_p8, %p199_p5 }
  0x14   :  { %209 = shalt.err (!%p206_p9)
}
  0x15   :  { %s238_s20 = smov 128   ;;  %s239_s21 = smov 8  }
  0x16   :  { %32 = dma.hbm_to_vmem [thread:$0]  %s276_s1, 512, %s27_s15, [#allocation6], %s238_s20, %s238_s20, %s239_s21  }
  0x17   :  { %230 = dma.done.wait [#allocation3], 128  }
  0x18   :  { %231 = vsyncadd [#allocation3], 4294967168 }
  0x19   :  { %232 = dma.done.wait [#allocation6], 512  }
  0x1a   :  { %233 = vsyncadd [#allocation6], 4294966784  ;;  %v240_v0 = vmov 0.0   ;;  %vm241_vm0 = vmmov 0   ;;  %v46_v1 = vld [vmem:[#allocation5 + $0x18] sm:$0xff]  ;;  %v45_v2 = vld [vmem:[#allocation5 + $0x10] sm:$0xff] }
  0x1b   :  { %152 = vmatprep.subr.mxu0 %v240_v0  ;;  %160 = vmatprep.mubr.msk.f32.mxu0 %vm241_vm0, %v240_v0  ;;  %v41_v3 = vld [vmem:[#allocation2] sm:$0xff]  ;;  %v44_v4 = vld [vmem:[#allocation5 + $0x8] sm:$0xff]  ;;  %v43_v5 = vld [vmem:[#allocation5] sm:$0xff]  ;;  %vm54_vm1 = vcmask 261120   ;;  %s242_s24 = smov [#allocation7]  }
  0x1c   :  { %153 = vmatpush3.msra.mxu0 %v46_v1  ;;  %v42_v6 = vmax.f32 %v41_v3, 0.0  ;;  %v145_v7 = vld [vmem:[%s277_s2] ss:$0 sm:$0xff]  ;;  %s135_s25 = sshll.u32 %s242_s24, 4  ;;  %s136_s25 = int_to_ptr.vmem [resolvable:$true] %s135_s25 }
  0x1d   :  { %154 = vmatprep.subr.mxu0 %v240_v0  ;;  %s210_s26 = scalar_lea.vmem %s136_s25, 128  ;;  %p215_p11 = scmp.lt.s32.totalorder %s136_s25, %s136_s25 }
  0x1e   :  { %155 = vmatpush3.msra.mxu0 %v45_v2  ;;  %p211_p10 = scmp.ne.s32.totalorder %s136_s25, %s210_s26  ;;  %p216_p12 = scmp.lt.s32.totalorder %s210_s26, %s210_s26 }
  0x1f   :  { %156 = vmatprep.subr.mxu0 %v240_v0 }
  0x20   :  { %157 = vmatpush3.msra.mxu0 %v44_v4  ;;  %p217_p13 = por %p216_p12, %p215_p11 }
  0x21   :  { %158 = vmatprep.subr.mxu0 %v240_v0 }
  0x22   :  { %159 = vmatpush3.msra.mxu0 %v43_v5  ;;  %p218_p0 = pnand %p217_p13, %p211_p10 }
  0x23   :  { %161 = vmatmul.mubr.msk.f32.vlgmr.msra.gmra.mxu0 %vm54_vm1, %v42_v6 }
  0xe3   :  { %v124_v8 = vpop.f32.mrf.mxu0 }
  0xe4   :  { %v125_v9 = vadd.f32 %v145_v7, %v124_v8 }
  0xe5   :  { %v162_v10 = vpop.f32.mrf.mxu0 }
  0xe6   :  { %128 = vst [vmem:[#allocation7] sm:$0xff] %v125_v9 }
  0xe7   :  { %221 = shalt.err (!%p218_p0)
}
  0xe8   :  { %138 = dma.vmem_to_hbm [thread:$0]  %s136_s25, 128, %s278_s3, [#allocation4]  }
  0xe9   :  { %234 = dma.done.wait [#allocation4], 128  }
  0xea   :  { %235 = vsyncadd [#allocation4], 4294967168 }
  0xeb   :  { %142 = vsyncpa [#allocation3], 1 }
  0xec   :  { %143 = vsyncpa [#allocation6], 1 }
  0xed   :  { %144 = vsyncpa [#allocation4], 1 }

</bundles_post_ra>
